<compile_context>
chip_gen: v7x
topology: tpu7x:2x2x1
jax: 0.10.0
libtpu: 0.0.40
codegen_flags: <defaults>
</compile_context>

<pallas_src>
import functools
import math

import jax
import jax.numpy as jnp
from jax.experimental import pallas as pl
from jax.experimental.pallas import tpu as pltpu


def make_positional_encoding_table(d_model: int, max_len: int = 5000) -> jnp.ndarray:
    """Deterministic buffer setup (mirrors the PyTorch __init__); handles odd d_model."""
    position = jnp.arange(0, max_len, dtype=jnp.float32)[:, None]            # (max_len, 1)
    div_term = jnp.exp(
        jnp.arange(0, d_model, 2, dtype=jnp.float32) * (-math.log(10000.0) / d_model)
    )                                                                        # (ceil(d/2),)
    angles = position * div_term                                             # (max_len, ceil(d/2))
    pe = jnp.zeros((max_len, d_model), dtype=jnp.float32)
    pe = pe.at[:, 0::2].set(jnp.sin(angles))
    pe = pe.at[:, 1::2].set(jnp.cos(angles)[:, : d_model // 2])              # guard odd d_model
    return pe                                                                # (max_len, d_model)


def _round_up(x: int, m: int) -> int:
    return ((x + m - 1) // m) * m


def _choose_seq_tile(seq_len: int, batch: int, d_model: int,
                     target_tile_bytes: int = 2 * 1024 * 1024) -> int:
    """Pick TS (multiple of 8 sublanes) so one x tile is <= ~2 MiB.

    Double-buffered footprint ~= 2 * (x_tile + out_tile + pe_tile) <= ~10 MiB,
    comfortably under the 16 MiB v5e scoped-VMEM default (32 MiB on v6e/v7x).
    """
    row_bytes = max(1, batch * d_model * 4)        # f32
    rows = max(1, target_tile_bytes // row_bytes)
    rows = max(8, (rows // 8) * 8)                 # (8, 128) sublane rule for the pe block
    rows = min(rows, _round_up(seq_len, 8))        # never larger than needed
    return int(rows)


def _pe_add_kernel(x_ref, pe_ref, o_ref, *, batch: int, d_model: int):
    # x_ref / o_ref: (TS, batch * d_model)  -- batch folded into the lane axis.
    # pe_ref:        (TS, d_model)
    pe = pe_ref[...]                               # load once, reused for every batch slice
    if batch == 1:
        o_ref[...] = (x_ref[...] + pe).astype(o_ref.dtype)
    else:
        for b in range(batch):                     # static unrolled loop -> static lane slices
            sl = slice(b * d_model, (b + 1) * d_model)
            o_ref[:, sl] = (x_ref[:, sl] + pe).astype(o_ref.dtype)


def positional_encoding_forward(x: jnp.ndarray, pe: jnp.ndarray, *,
                                seq_tile: int | None = None) -> jnp.ndarray:
    """
    x:  (seq_len, batch, d_model)
    pe: (max_len, d_model), max_len >= seq_len
    Returns (seq_len, batch, d_model): x + pe[:seq_len] broadcast over batch.
    """
    seq_len, batch, d_model = x.shape
    assert pe.shape[1] == d_model, "pe/d_model mismatch"
    assert pe.shape[0] >= seq_len, "seq_len exceeds max_len of the pe table"

    ts = seq_tile if seq_tile is not None else _choose_seq_tile(seq_len, batch, d_model)
    grid = (pl.cdiv(seq_len, ts),)

    # Free row-major reshape (no data movement): lanes become batch*d_model wide.
    x2 = x.reshape(seq_len, batch * d_model)

    kernel = functools.partial(_pe_add_kernel, batch=batch, d_model=d_model)

    elem_bytes = jnp.dtype(x.dtype).itemsize
    cost = pl.CostEstimate(
        flops=seq_len * batch * d_model,
        transcendentals=0,
        bytes_accessed=2 * seq_len * batch * d_model * elem_bytes + seq_len * d_model * 4,
    )

    out2 = pl.pallas_call(
        kernel,
        out_shape=jax.ShapeDtypeStruct((seq_len, batch * d_model), x.dtype),
        grid_spec=pltpu.PrefetchScalarGridSpec(
            num_scalar_prefetch=0,
            grid=grid,
            in_specs=[
                pl.BlockSpec((ts, batch * d_model), lambda i: (i, 0)),  # x tile
                pl.BlockSpec((ts, d_model), lambda i: (i, 0)),          # rows of the full pe table
            ],
            out_specs=pl.BlockSpec((ts, batch * d_model), lambda i: (i, 0)),
        ),
        compiler_params=pltpu.CompilerParams(
            dimension_semantics=("parallel",),   # independent seq tiles -> both TCs on v7x
        ),
        cost_estimate=cost,
    )(x2, pe)

    return out2.reshape(seq_len, batch, d_model)


if __name__ == "__main__":
    key = jax.random.PRNGKey(0)
    k1, k2 = jax.random.split(key)

    # Config 1: tiny d_model / batch (matches the module demo shapes).
    seq_len, batch, d_model = 8, 2, 32
    max_len = 64
    pe = make_positional_encoding_table(d_model, max_len)
    x = jax.random.normal(k1, (seq_len, batch, d_model), dtype=jnp.float32)
    out = jax.block_until_ready(positional_encoding_forward(x, pe))
    ref = x + pe[:seq_len, None, :]
    assert out.shape == (seq_len, batch, d_model)
    assert jnp.allclose(out, ref, atol=1e-6), "mismatch vs reference (config 1)"

    # Config 2: lane-dense d_model (multiple of 128), seq_len not a multiple of the
    # tile, forced small tile -> exercises a multi-step pipelined grid + ragged block.
    seq_len2, batch2, d_model2 = 20, 3, 128
    pe2 = make_positional_encoding_table(d_model2, max_len)
    x2 = jax.random.normal(k2, (seq_len2, batch2, d_model2), dtype=jnp.float32)
    out2 = jax.block_until_ready(positional_encoding_forward(x2, pe2, seq_tile=8))
    ref2 = x2 + pe2[:seq_len2, None, :]
    assert out2.shape == (seq_len2, batch2, d_model2)
    assert jnp.allclose(out2, ref2, atol=1e-6), "mismatch vs reference (config 2)"

    print("KERNEL_OK")
</pallas_src>

<mosaic_0001>
module attributes {stable_mosaic.version = 11 : i64} {
  func.func @_pe_add_kernel(%arg0: i32, %arg1: memref<8x64xf32, #tpu.memory_space<vmem>>, %arg2: memref<8x32xf32, #tpu.memory_space<vmem>>, %arg3: memref<8x64xf32, #tpu.memory_space<vmem>>) attributes {dimension_semantics = [#tpu.dimension_semantics<parallel>], iteration_bounds = array<i64: 1>, scalar_prefetch = 0 : i64, scratch_operands = 0 : i64, tpu.core_type = #tpu.core_type<tc>, window_params = [{transform_indices = @transform_0, window_bounds = array<i64: 8, 64>}, {transform_indices = @transform_1, window_bounds = array<i64: 8, 32>}, {transform_indices = @transform_2, window_bounds = array<i64: 8, 64>}]} {
    %c0 = arith.constant 0 : index
    %c0_0 = arith.constant 0 : index
    %0 = vector.load %arg2[%c0, %c0_0] : memref<8x32xf32, #tpu.memory_space<vmem>>, vector<8x32xf32>
    %c0_1 = arith.constant 0 : index
    %c0_2 = arith.constant 0 : index
    %1 = vector.load %arg1[%c0_1, %c0_2] : memref<8x64xf32, #tpu.memory_space<vmem>>, vector<8x32xf32>
    %2 = arith.addf %1, %0 : vector<8x32xf32>
    %c0_3 = arith.constant 0 : index
    %c0_4 = arith.constant 0 : index
    %3 = vector.load %arg3[%c0_3, %c0_4] : memref<8x64xf32, #tpu.memory_space<vmem>>, vector<8x32xf32>
    tpu.vector_store %arg3[%c0_3, %c0_4], %2 {strides = array<i32>} : memref<8x64xf32, #tpu.memory_space<vmem>>, vector<8x32xf32>,
    %c0_5 = arith.constant 0 : index
    %c32 = arith.constant 32 : index
    %4 = vector.load %arg1[%c0_5, %c32] : memref<8x64xf32, #tpu.memory_space<vmem>>, vector<8x32xf32>
    %5 = arith.addf %4, %0 : vector<8x32xf32>
    %c0_6 = arith.constant 0 : index
    %c32_7 = arith.constant 32 : index
    %6 = vector.load %arg3[%c0_6, %c32_7] : memref<8x64xf32, #tpu.memory_space<vmem>>, vector<8x32xf32>
    tpu.vector_store %arg3[%c0_6, %c32_7], %5 {strides = array<i32>} : memref<8x64xf32, #tpu.memory_space<vmem>>, vector<8x32xf32>,
    return
  }
  func.func @transform_0(%arg0: i32) -> (i32, i32) {
    %c0_i32 = arith.constant 0 : i32
    %c0_i32_0 = arith.constant 0 : i32
    return %arg0, %c0_i32 : i32, i32
  }
  func.func @transform_1(%arg0: i32) -> (i32, i32) {
    %c0_i32 = arith.constant 0 : i32
    %c0_i32_0 = arith.constant 0 : i32
    return %arg0, %c0_i32 : i32, i32
  }
  func.func @transform_2(%arg0: i32) -> (i32, i32) {
    %c0_i32 = arith.constant 0 : i32
    %c0_i32_0 = arith.constant 0 : i32
    return %arg0, %c0_i32 : i32, i32
  }
}

</mosaic_0001>

<bundles_post_ra>
// kernel: tpu_custom_call.1
= control target key start
LH: loop header
LB: loop body
LE: loop exit
PB: predicated region body
PF: predicated region fallthrough
CT: control target
= control target key end

     0   :  { %vm15_vm0 = vcmask 261120   ;;  %s100_s0 = inlined_call_operand.vmem [shape: f32[8,64], index: 0, kind: input, shape index: {}]   ;;  %s101_s1 = inlined_call_operand.vmem [shape: f32[64,32], index: 1, kind: input, shape index: {}]   ;;  %s102_s2 = inlined_call_operand.hbm [shape: f32[8,64], index: 2, kind: output, shape index: {}]  }
   0x1   :  { %v12_v0 = vld [vmem:[%s101_s1] sm:$0xff] }
   0x2   :  { %v13_v1 = vld [vmem:[%s100_s0] sm:$0xff] }
   0x3   :  { %7 = vsyncpa [#allocation3], 0  ;;  %v14_v2 = vadd.f32 %v13_v1, %v12_v0  ;;  %s65_s13 = smov 32   ;;  %s66_s14 = smov [#allocation2]   ;;  %vm23_vm1 = vcmask 523520  }
   0x4   :  { %19 = vrot.lane.b32.xlu0 %v12_v0, %s65_s13  ;;  %s31_s15 = sshll.u32 %s66_s14, 4  ;;  %s32_s15 = int_to_ptr.vmem [resolvable:$true] %s31_s15 }
   0x5   :  { %16 = vst.msk [vmem:[#allocation2] sm:$0xff] %vm15_vm0, %v14_v2  ;;  %s41_s16 = scalar_lea.vmem %s32_s15, 128  ;;  %p46_p1 = scmp.lt.s32.totalorder %s32_s15, %s32_s15 }
   0x6   :  { %p42_p0 = scmp.ne.s32.totalorder %s32_s15, %s41_s16  ;;  %p47_p2 = scmp.lt.s32.totalorder %s41_s16, %s41_s16 }
   0x8   :  { %p48_p3 = por %p47_p2, %p46_p1 }
   0xa   :  { %p49_p4 = pnand %p48_p3, %p42_p0 }
  0x76   :  { %v20_v3 = vpop.permute.xlu0 %19 }
  0x77   :  { %v22_v4 = vadd.f32 %v20_v3, %v13_v1 }
  0x79   :  { %24 = vst.msk [vmem:[#allocation2] sm:$0xff] %vm23_vm1, %v22_v4 }
  0x7a   :  { %52 = shalt.err (!%p49_p4)
}
  0x7b   :  { %s53_s17 = scalar_lea.hbm %s102_s2, 128 }
  0x7c   :  { %p54_p5 = scmp.ne.s32.totalorder %s102_s2, %s53_s17  ;;  %p57_p6 = scmp.lt.u32.totalorder %s53_s17, %s102_s2 }
  0x7e   :  { %p59_p7 = pnand %p57_p6, %p54_p5 }
  0x80   :  { %62 = shalt.err (!%p59_p7)
}
  0x81   :  { %34 = dma.vmem_to_hbm [thread:$0]  %s32_s15, 128, %s102_s2, [#allocation3]  }
  0x82   :  { %63 = dma.done.wait [#allocation3], 128  }
  0x83   :  { %64 = vsyncadd [#allocation3], 4294967168 }
  0x84   :  { %38 = vsyncpa [#allocation3], 1 }

</bundles_post_ra>
